<compile_context>
chip_gen: v7x
topology: tpu7x:2x2x1
jax: 0.10.0
libtpu: 0.0.40
codegen_flags: <defaults>
</compile_context>

<pallas_src>
import jax
import jax.numpy as jnp
from jax.experimental import pallas as pl
from jax.experimental.pallas import tpu as pltpu


def _mlp_kernel(*refs):
    """Fused depth-layer (block-diagonal packed) MLP, ReLU after every layer."""
    x_ref, o_ref = refs[0], refs[-1]
    wb = refs[1:-1]
    n_layers = len(wb) // 2

    # In-kernel f32 -> bf16 cast: cheaper than a separate wrapper-side XLA pass.
    h = x_ref[...].astype(jnp.bfloat16)
    for l in range(n_layers):
        w_ref, b_ref = wb[2 * l], wb[2 * l + 1]
        h = jnp.dot(h, w_ref[...], preferred_element_type=jnp.float32) + b_ref[...]
        h = jnp.maximum(h, 0.0)                 # ReLU (also after the final layer)
        if l + 1 < n_layers:
            h = h.astype(jnp.bfloat16)          # MXU input dtype for next layer
    o_ref[...] = h.astype(o_ref.dtype)


def _default_group():
    """Packing factor G: fill the MXU width (256-wide -> 8, 128-wide -> 4)."""
    try:
        kind = jax.devices()[0].device_kind.lower()
    except Exception:
        return 8
    return 8 if any(s in kind for s in ("v6", "v7", "tpu7")) else 4


def xtoc_forward(x, params, *, group=None, tile_rows=16384):
    """Fused XtoCModel forward.

    x:         (batch, inputs) float32
    params:    list of (W, b); W is (in, out) (= PyTorch weight.T), b is (out,)
    group:     batch lane-packing factor G (default 8 on v6e/v7x, 4 otherwise)
    tile_rows: batch-tile size in ORIGINAL rows (>=8K amortizes grid overhead)
    """
    if group is None:
        group = _default_group()
    batch, in_dim = x.shape
    out_dim = params[-1][0].shape[1]

    # ---- pack G batch rows into one lane-row --------------------------------
    pad = (-batch) % group
    if pad:
        x = jnp.concatenate([x, jnp.zeros((pad, in_dim), x.dtype)], axis=0)
    bp = (batch + pad) // group                     # packed rows
    x_packed = x.reshape(bp, in_dim * group)        # free row-major view, f32

    # ---- packed batch tile ---------------------------------------------------
    tbp = min(bp, max(1, tile_rows // group))
    if tbp < bp:
        tbp = max(8, (tbp // 8) * 8)                # sublane multiple unless full
    grid = (pl.cdiv(bp, tbp),)

    eye = jnp.eye(group, dtype=jnp.float32)
    flat_args = [x_packed]
    in_specs = [pl.BlockSpec((tbp, in_dim * group), lambda i: (i, 0))]
    flops = 0
    param_bytes = 0
    for w, b in params:
        # Block-diagonal packed weight: x_packed @ blockdiag(W x G) applies W
        # independently to each of the G packed rows.
        wg = jnp.kron(eye, w).astype(jnp.bfloat16)                       # (in*G, out*G)
        bg = jnp.tile(jnp.reshape(b, (1, -1)), (1, group)).astype(jnp.float32)
        flat_args += [wg, bg]
        # Constant index_map + single buffer: parameters stay VMEM-resident.
        in_specs += [
            pl.BlockSpec(wg.shape, lambda i: (0, 0), pipeline_mode=pl.Buffered(1)),
            pl.BlockSpec(bg.shape, lambda i: (0, 0), pipeline_mode=pl.Buffered(1)),
        ]
        flops += 2 * bp * wg.shape[0] * wg.shape[1] + bp * bg.shape[1]
        param_bytes += wg.size * 2 + bg.size * 4

    bytes_accessed = x_packed.size * 4 + bp * out_dim * group * 4 + param_bytes

    out_packed = pl.pallas_call(
        _mlp_kernel,
        out_shape=jax.ShapeDtypeStruct((bp, out_dim * group), jnp.float32),
        grid=grid,
        in_specs=in_specs,
        out_specs=pl.BlockSpec((tbp, out_dim * group), lambda i: (i, 0)),
        compiler_params=pltpu.CompilerParams(
            dimension_semantics=("parallel",),
            vmem_limit_bytes=32 * 1024 * 1024,
        ),
        cost_estimate=pl.CostEstimate(
            flops=flops, transcendentals=0, bytes_accessed=bytes_accessed),
    )(*flat_args)

    # Unpack: (bp, out*G) -> (batch_padded, out) is a free row-major view.
    out = out_packed.reshape(bp * group, out_dim)
    return out[:batch] if pad else out


def init_params(key, inputs, concepts, latents=0, depth=4, width=32):
    """Deterministic synthetic init matching XtoCModel layer shapes."""
    params = []
    prev = inputs
    for i in range(depth):
        out = (concepts + latents) if i == depth - 1 else width
        key, kw, kb = jax.random.split(key, 3)
        bound = 1.0 / jnp.sqrt(prev)   # PyTorch default: U(-1/sqrt(fan_in), .)
        w = jax.random.uniform(kw, (prev, out), jnp.float32, -bound, bound)
        b = jax.random.uniform(kb, (out,), jnp.float32, -bound, bound)
        params.append((w, b))
        prev = out
    return params


def reference_forward(x, params, dtype=jnp.bfloat16):
    """Pure-JAX reference. dtype=bfloat16 mirrors the kernel's matmul math;
    dtype=float32 is the exact PyTorch-style forward."""
    h = x
    for w, b in params:
        h = jnp.dot(h.astype(dtype), w.astype(dtype),
                    preferred_element_type=jnp.float32) + jnp.reshape(b, (1, -1))
        h = jnp.maximum(h, 0.0)
    return h


if __name__ == "__main__":
    INPUTS, CONCEPTS, LATENTS, DEPTH, WIDTH = 32, 8, 0, 4, 32
    BATCH = 1000   # small demo batch; exercises a partial last grid tile

    key = jax.random.PRNGKey(0)
    key, kx = jax.random.split(key)
    x = jax.random.normal(kx, (BATCH, INPUTS), jnp.float32)
    params = init_params(key, INPUTS, CONCEPTS, LATENTS, DEPTH, WIDTH)

    # Small tile_rows so the demo runs a 2-step pipelined grid; production use
    # should keep the default (~16K rows per tile).
    out = xtoc_forward(x, params, tile_rows=512)
    out = jax.block_until_ready(out)

    assert out.shape == (BATCH, CONCEPTS + LATENTS)
    ref_bf16 = reference_forward(x, params, jnp.bfloat16)   # mirrors kernel math
    ref_f32 = reference_forward(x, params, jnp.float32)     # exact f32 forward
    assert jnp.allclose(out, ref_bf16, atol=1e-2, rtol=1e-2), (
        float(jnp.max(jnp.abs(out - ref_bf16))))
    assert jnp.allclose(out, ref_f32, atol=1e-1, rtol=1e-1), (
        float(jnp.max(jnp.abs(out - ref_f32))))

    print("KERNEL_OK")
</pallas_src>

<mosaic_0001>
module attributes {stable_mosaic.version = 11 : i64} {
  func.func @_mlp_kernel(%arg0: i32, %arg1: memref<128x128xf32, #tpu.memory_space<vmem>>, %arg2: memref<128x128xbf16, #tpu.memory_space<vmem>>, %arg3: memref<1x128xf32, #tpu.memory_space<vmem>>, %arg4: memref<128x128xbf16, #tpu.memory_space<vmem>>, %arg5: memref<1x128xf32, #tpu.memory_space<vmem>>, %arg6: memref<128x128xbf16, #tpu.memory_space<vmem>>, %arg7: memref<1x128xf32, #tpu.memory_space<vmem>>, %arg8: memref<128x32xbf16, #tpu.memory_space<vmem>>, %arg9: memref<1x32xf32, #tpu.memory_space<vmem>>, %arg10: memref<128x32xf32, #tpu.memory_space<vmem>>) attributes {dimension_semantics = [#tpu.dimension_semantics<parallel>], iteration_bounds = array<i64: 2>, scalar_prefetch = 0 : i64, scratch_operands = 0 : i64, tpu.core_type = #tpu.core_type<tc>, window_params = [{transform_indices = @transform_0, window_bounds = array<i64: 128, 128>}, {pipeline_mode = #tpu.pipeline_mode<synchronous>, transform_indices = @transform_1, window_bounds = array<i64: 128, 128>}, {pipeline_mode = #tpu.pipeline_mode<synchronous>, transform_indices = @transform_2, window_bounds = array<i64: 1, 128>}, {pipeline_mode = #tpu.pipeline_mode<synchronous>, transform_indices = @transform_3, window_bounds = array<i64: 128, 128>}, {pipeline_mode = #tpu.pipeline_mode<synchronous>, transform_indices = @transform_4, window_bounds = array<i64: 1, 128>}, {pipeline_mode = #tpu.pipeline_mode<synchronous>, transform_indices = @transform_5, window_bounds = array<i64: 128, 128>}, {pipeline_mode = #tpu.pipeline_mode<synchronous>, transform_indices = @transform_6, window_bounds = array<i64: 1, 128>}, {pipeline_mode = #tpu.pipeline_mode<synchronous>, transform_indices = @transform_7, window_bounds = array<i64: 128, 32>}, {pipeline_mode = #tpu.pipeline_mode<synchronous>, transform_indices = @transform_8, window_bounds = array<i64: 1, 32>}, {transform_indices = @transform_9, window_bounds = array<i64: 128, 32>}]} {
    %c0 = arith.constant 0 : index
    %c0_0 = arith.constant 0 : index
    %0 = vector.load %arg1[%c0, %c0_0] : memref<128x128xf32, #tpu.memory_space<vmem>>, vector<128x128xf32>
    %1 = arith.truncf %0 : vector<128x128xf32> to vector<128x128xbf16>
    %c0_1 = arith.constant 0 : index
    %c0_2 = arith.constant 0 : index
    %2 = vector.load %arg2[%c0_1, %c0_2] : memref<128x128xbf16, #tpu.memory_space<vmem>>, vector<128x128xbf16>
    %cst = arith.constant dense<0.000000e+00> : vector<128x128xf32>
    %3 = tpu.matmul %1, %2, %cst {dimension_numbers = #tpu.dot_dimension_numbers<[1], [0], [0], [1], [0, 0, 1, 1], [], []>} : vector<128x128xbf16>, vector<128x128xbf16>, vector<128x128xf32> -> vector<128x128xf32>
    %c0_3 = arith.constant 0 : index
    %c0_4 = arith.constant 0 : index
    %4 = vector.load %arg3[%c0_3, %c0_4] : memref<1x128xf32, #tpu.memory_space<vmem>>, vector<1x128xf32>
    %5 = vector.broadcast %4 : vector<1x128xf32> to vector<128x128xf32>
    %6 = arith.addf %3, %5 : vector<128x128xf32>
    %cst_5 = arith.constant 0.000000e+00 : f32
    %7 = vector.broadcast %cst_5 : f32 to vector<128x128xf32>
    %8 = arith.maximumf %6, %7 : vector<128x128xf32>
    %9 = arith.truncf %8 : vector<128x128xf32> to vector<128x128xbf16>
    %c0_6 = arith.constant 0 : index
    %c0_7 = arith.constant 0 : index
    %10 = vector.load %arg4[%c0_6, %c0_7] : memref<128x128xbf16, #tpu.memory_space<vmem>>, vector<128x128xbf16>
    %cst_8 = arith.constant dense<0.000000e+00> : vector<128x128xf32>
    %11 = tpu.matmul %9, %10, %cst_8 {dimension_numbers = #tpu.dot_dimension_numbers<[1], [0], [0], [1], [0, 0, 1, 1], [], []>} : vector<128x128xbf16>, vector<128x128xbf16>, vector<128x128xf32> -> vector<128x128xf32>
    %c0_9 = arith.constant 0 : index
    %c0_10 = arith.constant 0 : index
    %12 = vector.load %arg5[%c0_9, %c0_10] : memref<1x128xf32, #tpu.memory_space<vmem>>, vector<1x128xf32>
    %13 = vector.broadcast %12 : vector<1x128xf32> to vector<128x128xf32>
    %14 = arith.addf %11, %13 : vector<128x128xf32>
    %cst_11 = arith.constant 0.000000e+00 : f32
    %15 = vector.broadcast %cst_11 : f32 to vector<128x128xf32>
    %16 = arith.maximumf %14, %15 : vector<128x128xf32>
    %17 = arith.truncf %16 : vector<128x128xf32> to vector<128x128xbf16>
    %c0_12 = arith.constant 0 : index
    %c0_13 = arith.constant 0 : index
    %18 = vector.load %arg6[%c0_12, %c0_13] : memref<128x128xbf16, #tpu.memory_space<vmem>>, vector<128x128xbf16>
    %cst_14 = arith.constant dense<0.000000e+00> : vector<128x128xf32>
    %19 = tpu.matmul %17, %18, %cst_14 {dimension_numbers = #tpu.dot_dimension_numbers<[1], [0], [0], [1], [0, 0, 1, 1], [], []>} : vector<128x128xbf16>, vector<128x128xbf16>, vector<128x128xf32> -> vector<128x128xf32>
    %c0_15 = arith.constant 0 : index
    %c0_16 = arith.constant 0 : index
    %20 = vector.load %arg7[%c0_15, %c0_16] : memref<1x128xf32, #tpu.memory_space<vmem>>, vector<1x128xf32>
    %21 = vector.broadcast %20 : vector<1x128xf32> to vector<128x128xf32>
    %22 = arith.addf %19, %21 : vector<128x128xf32>
    %cst_17 = arith.constant 0.000000e+00 : f32
    %23 = vector.broadcast %cst_17 : f32 to vector<128x128xf32>
    %24 = arith.maximumf %22, %23 : vector<128x128xf32>
    %25 = arith.truncf %24 : vector<128x128xf32> to vector<128x128xbf16>
    %c0_18 = arith.constant 0 : index
    %c0_19 = arith.constant 0 : index
    %26 = vector.load %arg8[%c0_18, %c0_19] : memref<128x32xbf16, #tpu.memory_space<vmem>>, vector<128x32xbf16>
    %cst_20 = arith.constant dense<0.000000e+00> : vector<128x32xf32>
    %27 = tpu.matmul %25, %26, %cst_20 {dimension_numbers = #tpu.dot_dimension_numbers<[1], [0], [0], [1], [0, 0, 1, 1], [], []>} : vector<128x128xbf16>, vector<128x32xbf16>, vector<128x32xf32> -> vector<128x32xf32>
    %c0_21 = arith.constant 0 : index
    %c0_22 = arith.constant 0 : index
    %28 = vector.load %arg9[%c0_21, %c0_22] : memref<1x32xf32, #tpu.memory_space<vmem>>, vector<1x32xf32>
    %29 = vector.broadcast %28 : vector<1x32xf32> to vector<128x32xf32>
    %30 = arith.addf %27, %29 : vector<128x32xf32>
    %cst_23 = arith.constant 0.000000e+00 : f32
    %31 = vector.broadcast %cst_23 : f32 to vector<128x32xf32>
    %32 = arith.maximumf %30, %31 : vector<128x32xf32>
    %c0_24 = arith.constant 0 : index
    %c0_25 = arith.constant 0 : index
    %33 = vector.load %arg10[%c0_24, %c0_25] : memref<128x32xf32, #tpu.memory_space<vmem>>, vector<128x32xf32>
    tpu.vector_store %arg10[%c0_24, %c0_25], %32 {strides = array<i32>} : memref<128x32xf32, #tpu.memory_space<vmem>>, vector<128x32xf32>,
    return
  }
  func.func @transform_0(%arg0: i32) -> (i32, i32) {
    %c0_i32 = arith.constant 0 : i32
    %c0_i32_0 = arith.constant 0 : i32
    return %arg0, %c0_i32 : i32, i32
  }
  func.func @transform_1(%arg0: i32) -> (i32, i32) {
    %c0_i32 = arith.constant 0 : i32
    %c0_i32_0 = arith.constant 0 : i32
    %c0_i32_1 = arith.constant 0 : i32
    return %c0_i32, %c0_i32_0 : i32, i32
  }
  func.func @transform_2(%arg0: i32) -> (i32, i32) {
    %c0_i32 = arith.constant 0 : i32
    %c0_i32_0 = arith.constant 0 : i32
    %c0_i32_1 = arith.constant 0 : i32
    return %c0_i32, %c0_i32_0 : i32, i32
  }
  func.func @transform_3(%arg0: i32) -> (i32, i32) {
    %c0_i32 = arith.constant 0 : i32
    %c0_i32_0 = arith.constant 0 : i32
    %c0_i32_1 = arith.constant 0 : i32
    return %c0_i32, %c0_i32_0 : i32, i32
  }
  func.func @transform_4(%arg0: i32) -> (i32, i32) {
    %c0_i32 = arith.constant 0 : i32
    %c0_i32_0 = arith.constant 0 : i32
    %c0_i32_1 = arith.constant 0 : i32
    return %c0_i32, %c0_i32_0 : i32, i32
  }
  func.func @transform_5(%arg0: i32) -> (i32, i32) {
    %c0_i32 = arith.constant 0 : i32
    %c0_i32_0 = arith.constant 0 : i32
    %c0_i32_1 = arith.constant 0 : i32
    return %c0_i32, %c0_i32_0 : i32, i32
  }
  func.func @transform_6(%arg0: i32) -> (i32, i32) {
    %c0_i32 = arith.constant 0 : i32
    %c0_i32_0 = arith.constant 0 : i32
    %c0_i32_1 = arith.constant 0 : i32
    return %c0_i32, %c0_i32_0 : i32, i32
  }
  func.func @transform_7(%arg0: i32) -> (i32, i32) {
    %c0_i32 = arith.constant 0 : i32
    %c0_i32_0 = arith.constant 0 : i32
    %c0_i32_1 = arith.constant 0 : i32
    return %c0_i32, %c0_i32_0 : i32, i32
  }
  func.func @transform_8(%arg0: i32) -> (i32, i32) {
    %c0_i32 = arith.constant 0 : i32
    %c0_i32_0 = arith.constant 0 : i32
    %c0_i32_1 = arith.constant 0 : i32
    return %c0_i32, %c0_i32_0 : i32, i32
  }
  func.func @transform_9(%arg0: i32) -> (i32, i32) {
    %c0_i32 = arith.constant 0 : i32
    %c0_i32_0 = arith.constant 0 : i32
    return %arg0, %c0_i32 : i32, i32
  }
}

</mosaic_0001>

<bundles_post_ra>
// kernel: tpu_custom_call.1
= control target key start
LH: loop header
LB: loop body
LE: loop exit
PB: predicated region body
PF: predicated region fallthrough
CT: control target
= control target key end

     0   :  { %14 = vsyncpa [#allocation3], 0  ;;  %s2087_s0 = inlined_call_operand.hbm [shape: f32[250,128], index: 0, kind: input, shape index: {}]   ;;  %s2088_s1 = inlined_call_operand.vmem [shape: bf16[128,128], index: 1, kind: input, shape index: {}]   ;;  %s2089_s2 = inlined_call_operand.vmem [shape: f32[1,128], index: 2, kind: input, shape index: {}]   ;;  %s2090_s3 = inlined_call_operand.hbm [shape: bf16[128,128], index: 3, kind: input, shape index: {}]   ;;  %s2091_s4 = inlined_call_operand.vmem [shape: f32[1,128], index: 4, kind: input, shape index: {}]   ;;  %s2092_s5 = inlined_call_operand.hbm [shape: bf16[128,128], index: 5, kind: input, shape index: {}]   ;;  %s2093_s6 = inlined_call_operand.vmem [shape: f32[1,128], index: 6, kind: input, shape index: {}]   ;;  %s2094_s7 = inlined_call_operand.vmem [shape: bf16[128,32], index: 7, kind: input, shape index: {}]   ;;  %s2095_s8 = inlined_call_operand.vmem [shape: f32[1,32], index: 8, kind: input, shape index: {}]   ;;  %s2096_s9 = inlined_call_operand.vmem [shape: f32[250,32], index: 9, kind: output, shape index: {}]  }
   0x1   :  { %16 = vsyncpa [#allocation3 + $0x1], 0 }
   0x2   :  { %17 = vsyncpa [#allocation5], 0  ;;  %s1797_s30 = smov 0   ;;  %s1799_s10 = smov 0  }
   0x3   :  { %s1801_s11 = smov 0   ;;  %s1803_s12 = smov 0  }
   0x4 LB: > { %s1272_s13 = sadd.s32 4294967295, %s1738_s12   ;;  %p43_p0 = scmp.ne.s32.totalorder %s1730_s10, %s1726_s30  ;;  %s1738_s12 = sphi %s1803_s12, %s2112_s12   ;;  %s1734_s11 = sphi %s1801_s11, %s2111_s11   ;;  %s1730_s10 = sphi %s1799_s10, %s2110_s10   ;;  %s1726_s30 = sphi %s1797_s30, %s2109_s30  }
   0x5   : > { %p1819_p1 = scmp.eq.s32.totalorder %s1272_s13, 0  ;;  %p1274_p2 = scmp.ge.s32.totalorder %s1738_s12, 1 }
   0x6   : > { %p248_p3 = scmp.lt.s32.totalorder %s1738_s12, 3  ;;  %s1740_s17 = smov [#allocation4]  }
   0x7   : > { %s2101_s14 = scalar_select %p1819_p1, 1, 0 }
   0x8   : > { %p1827_p4 = por %p1819_p1, %p43_p0  ;;  %p1831_p5 = pnand %p1274_p2, %p248_p3 }
   0x9   : > { %s266_s18 = sshll.u32 %s1740_s17, 4  ;;  %s1741_s20 = smov [#allocation6]   ;;  %s267_s18 = int_to_ptr.vmem [resolvable:$true] %s266_s18 }
   0xa   : > { %s2102_s15 = scalar_select %p1827_p4, 1, 0 }
   0xb   : > { %s2103_s16 = scalar_select %p1831_p5, 1, 0 }
   0xc   : > { %p1528_p6 = pneg %p1831_p5  ;;  %s282_s21 = sshll.u32 %s1741_s20, 4  ;;  %s1843_s21 = int_to_ptr.vmem [resolvable:$true] %s282_s21 }
   0xd   : > { %s1614_s24 = scalar_lea.hbm %s2090_s3, 1024 }
   0xe   : > { %p1839_p7 = pnand %p1528_p6, %p1819_p1  ;;  %p1615_p8 = scmp.ne.s32.totalorder %s2090_s3, %s1614_s24 }
   0xf   : > { %p1621_p12 = scmp.lt.u32.totalorder %s1614_s24, %s2090_s3 }
  0x10   : > { %p1616_p9 = pneg %p1839_p7 }
  0x12   : > { %p1617_p10 = pnand %p1616_p9, %p1615_p8 }
  0x14   : > { %p1618_p11 = pneg %p1617_p10 }
  0x16   : > { %p1623_p13 = pnand %p1621_p12, %p1618_p11 }
  0x18   : > { %1626 = shalt.err (!%p1623_p13)
}
  0x19   : > { %s1627_s29 = scalar_lea.vmem %s267_s18, 1024  ;;  %p1635_p6 = scmp.lt.s32.totalorder %s267_s18, %s267_s18 }
  0x1a   : > { %p1628_p0 = scmp.ne.s32.totalorder %s267_s18, %s1627_s29  ;;  %p1636_p1 = scmp.lt.s32.totalorder %s1627_s29, %s1627_s29 }
  0x1c   : > { %p1630_p2 = pnand %p1628_p0, %p1616_p9  ;;  %p1637_p4 = por %p1636_p1, %p1635_p6 }
  0x1e   : > { %p1631_p3 = pneg %p1630_p2 }
  0x20   : > { %p1638_p5 = pnand %p1637_p4, %p1631_p3 }
  0x22   : > { %1641 = shalt.err (!%p1638_p5)
}
  0x23   : > { %s1742_s30 = smov 64   ;;  %s1743_s17 = smov 4  }
  0x24   : > { %1531 = dma.hbm_to_vmem [thread:$0]  (!%p1839_p7), %s2090_s3, 1024, %s267_s18, [#allocation5], %s1742_s30, %s1742_s30, %s1743_s17  }
  0x25   : > { %s1642_s25 = scalar_lea.hbm %s2092_s5, 1024 }
  0x26   : > { %p1643_p8 = scmp.ne.s32.totalorder %s2092_s5, %s1642_s25  ;;  %p1649_p5 = scmp.lt.u32.totalorder %s1642_s25, %s2092_s5 }
  0x28   : > { %p1645_p1 = pnand %p1643_p8, %p1616_p9 }
  0x2a   : > { %p1646_p4 = pneg %p1645_p1 }
  0x2c   : > { %p1651_p10 = pnand %p1649_p5, %p1646_p4 }
  0x2e   : > { %1654 = shalt.err (!%p1651_p10)
}
  0x2f   : > { %s1655_s18 = scalar_lea.vmem %s1843_s21, 1024  ;;  %p1663_p0 = scmp.lt.s32.totalorder %s1843_s21, %s1843_s21 }
  0x30   : > { %p1656_p11 = scmp.ne.s32.totalorder %s1843_s21, %s1655_s18  ;;  %p1664_p2 = scmp.lt.s32.totalorder %s1655_s18, %s1655_s18 }
  0x32   : > { %p1658_p12 = pnand %p1656_p11, %p1616_p9  ;;  %p1665_p3 = por %p1664_p2, %p1663_p0 }
  0x34   : > { %p1659_p13 = pneg %p1658_p12 }
  0x36   : > { %p1666_p6 = pnand %p1665_p3, %p1659_p13 }
  0x38   : > { %1669 = shalt.err (!%p1666_p6)
}
  0x39   : > { %1534 = dma.hbm_to_vmem [thread:$0]  (!%p1839_p7), %s2092_s5, 1024, %s1843_s21, [#allocation5], %s1742_s30, %s1742_s30, %s1743_s17  }
  0x3a   : > { %s1893_s23 = sadd.s32 1, %s1738_s12   ;;  %s30_s24 = sadd.s32 1, %s1734_s11 }
  0x3b   : > { %s27_s19 = ssub.s32 %s1738_s12, %s1893_s23  ;;  %p37_p9 = scmp.ne.s32.totalorder %s1734_s11, %s1730_s10 }
  0x3c   : > { %p28_p8 = scmp.eq.s32.totalorder %s27_s19, 0  ;;  %p38_p1 = scmp.eq.s32.totalorder %s1738_s12, 0 }
  0x3d   : > { %p1541_p4 = scmp.lt.s32.totalorder %s1738_s12, 2  ;;  %s305_s25 = sand.u32 1, %s1734_s11  }
  0x3e   : > { %s1904_s26 = scalar_select %p28_p8, %s1734_s11, %s30_s24  }
  0x3f   : > { %p39_p5 = por %p38_p1, %p37_p9  ;;  %s1278_s27 = sshll.u32 %s305_s25, 7 }
  0x40   : > { %s1325_s28 = sshll.u32 %s1738_s12, 11  ;;  %s309_s21 = scalar_lea.vmem [#allocation2], %s1278_s27 }
  0x41   : > { %s1910_s20 = scalar_lea.hbm %s2087_s0, %s1325_s28  ;;  %s316_s30 = sshll.u32 %s309_s21, 4  ;;  %s1916_s30 = int_to_ptr.vmem [resolvable:$true] %s316_s30 }
  0x42   : > { %p1912_p7 = pnand %p1541_p4, %p39_p5  ;;  %s1918_s22 = scalar_lea.sflag [#allocation3], %s305_s25 }
  0x43   : > { %s1670_s24 = scalar_lea.hbm %s1910_s20, 2048  ;;  %s1675_s28 = scalar_lea.hbm %s2087_s0, 4096 }
  0x44   : > { %p1671_p10 = scmp.ne.s32.totalorder %s1910_s20, %s1670_s24  ;;  %p1672_p11 = pneg %p1912_p7 }
  0x45   : > { %p1676_p0 = scmp.lt.u32.totalorder %s1910_s20, %s2087_s0  ;;  %p1677_p2 = scmp.lt.u32.totalorder %s1675_s28, %s1670_s24 }
  0x46   : > { %p1673_p12 = pnand %p1672_p11, %p1671_p10  ;;  %p1679_p6 = scmp.lt.u32.totalorder %s1670_s24, %s1910_s20 }
  0x47   : > { %p1678_p3 = por %p1677_p2, %p1676_p0 }
  0x48   : > { %p1674_p13 = pneg %p1673_p12 }
  0x49   : > { %p1680_p9 = por %p1679_p6, %p1678_p3 }
  0x4b   : > { %p1681_p8 = pnand %p1680_p9, %p1674_p13 }
  0x4d   : > { %1684 = shalt.err (!%p1681_p8)
}
  0x4e   : > { %s1685_s25 = scalar_lea.vmem %s1916_s30, 2048  ;;  %s1744_s21 = smov [#allocation2]  }
  0x4f   : > { %p1686_p1 = scmp.ne.s32.totalorder %s1916_s30, %s1685_s25  ;;  %s1690_s19 = sshll.u32 %s1744_s21, 4  ;;  %s1691_s19 = int_to_ptr.vmem [resolvable:$false] %s1690_s19 }
  0x50   : > { %s1692_s27 = scalar_lea.vmem %s1691_s19, 4096  ;;  %p1693_p10 = scmp.lt.s32.totalorder %s1916_s30, %s1691_s19 }
  0x51   : > { %p1688_p4 = pnand %p1686_p1, %p1672_p11  ;;  %p1694_p12 = scmp.lt.s32.totalorder %s1692_s27, %s1685_s25 }
  0x53   : > { %p1689_p5 = pneg %p1688_p4  ;;  %p1695_p0 = por %p1694_p12, %p1693_p10 }
  0x55   : > { %p1696_p2 = pnand %p1695_p0, %p1689_p5 }
  0x57   : > { %1699 = shalt.err (!%p1696_p2)
}
  0x58   : > { %s1745_s24 = smov 128   ;;  %s1746_s28 = smov 8  }
  0x59   : > { %1538 = dma.hbm_to_vmem [thread:$0]  (!%p1912_p7), %s1910_s20, 2048, %s1916_s30, %s1918_s22, %s1745_s24, %s1745_s24, %s1746_s28  }
  0x5a   : > { %p2106_p11 = scmp.ne.s32.totalorder %s2103_s16, 0 }
  0x5b   : > { %s330_s29 = sand.u32 (!%p2106_p11), 1, %s1730_s10   ;;  %p2107_p13 = scmp.ne.s32.totalorder (!%p2106_p11), %s2102_s15, 0 }
  0x5c   : > { %328 = sbr.rel (%p2106_p11) target bundleno = 1046 (0x416), region = 56  ;;  %s1282_s18 = sshll.u32 (!%p2106_p11), %s330_s29, 7 }
  0x5d   : > { %s331_s21 = scalar_lea.sflag (!%p2106_p11), [#allocation3], %s330_s29  ;;  %s1949_s25 = scalar_lea.vmem (!%p2106_p11), [#allocation2], %s1282_s18 }
  0x63   : > { %1717 = dma.done.wait (%p2107_p13), %s331_s21, 2048  }
  0x64   : > { %1719 = vsyncadd (%p2107_p13), %s331_s21, 4294965248  ;;  %p2108_p3 = scmp.ne.s32.totalorder %s2101_s14, 0 }
  0x66   : > { %1721 = dma.done.wait (%p2108_p3), [#allocation5], 2048  }
  0x67   : > { %1723 = vsyncadd (%p2108_p3), [#allocation5], 4294965248  ;;  %v1582_v0 = vld [vmem:[%s2088_s1] sm:$0xff]   ;;  %v1583_v1 = vld [vmem:[%s2088_s1 + $0x8] sm:$0xff]   ;;  %s1285_s27 = sshll.u32 %s1272_s13, 4  ;;  %vm1169_vm0 = vcmask 261120  }
  0x68   : > { %1390 = vmatprep.subr.bf16.mxu0 %v1582_v0  ;;  %v1584_v2 = vld [vmem:[%s2088_s1 + $0x10] sm:$0xff]   ;;  %v1585_v3 = vld [vmem:[%s2088_s1 + $0x18] sm:$0xff]   ;;  %v385_v4 = vld [vmem:[%s1949_s25] sm:$0xff]  ;;  %p379_p7 = scmp.lt.s32.totalorder %s1285_s27, 31 }
  0x69   : > { %1391 = vmatpush3.bf16.msra.mxu0 %v1582_v0  ;;  %v386_v5 = vld [vmem:[%s1949_s25 + $0x8] sm:$0xff]  ;;  %v1586_v7 = vld [vmem:[%s2088_s1 + $0x20] sm:$0xff]   ;;  %v1592_v11 = vld [vmem:[#allocation4 + $0x10] sm:$0xff]  }
  0x6a   : > { %1392 = vmatprep.subr.bf16.mxu0 %v1583_v1  ;;  %v401_v6 = vpack.c.bf16 %v386_v5, %v385_v4  ;;  %v1590_v8 = vld [vmem:[#allocation4] sm:$0xff]   ;;  %v1591_v9 = vld [vmem:[#allocation4 + $0x8] sm:$0xff]   ;;  %v1588_v12 = vld [vmem:[%s2088_s1 + $0x30] sm:$0xff]   ;;  %s2114_s27 = smov (!%p379_p7, %s1285_s27), 31 }
  0x6b   : > { %v1587_v10 = vld [vmem:[%s2088_s1 + $0x28] sm:$0xff]   ;;  %1422 = vmatprep.subr.bf16.mxu1 %v1590_v8  ;;  %v1593_v13 = vld [vmem:[#allocation4 + $0x18] sm:$0xff]   ;;  %v1594_v15 = vld [vmem:[#allocation4 + $0x20] sm:$0xff]   ;;  %s1286_s29 = sshll.u32 %s2114_s27, 3 }
  0x6c   : > { %1406 = vmatprep.mubr.bf16.mxu0 %v401_v6  ;;  %1423 = vmatpush3.bf16.msra.mxu1 %v1590_v8  ;;  %v1589_v14 = vld [vmem:[%s2088_s1 + $0x38] sm:$0xff]   ;;  %v387_v16 = vld [vmem:[%s1949_s25 + $0x10] sm:$0xff]  ;;  %v389_v18 = vld [vmem:[%s1949_s25 + $0x20] sm:$0xff]  ;;  %s2040_s16 = scalar_lea.vmem %s2096_s9, %s1286_s29 }
  0x6d   : > { %1393 = vmatpush3.bf16.msra.mxu0 %v1583_v1  ;;  %1424 = vmatprep.subr.bf16.mxu1 %v1591_v9  ;;  %v388_v17 = vld [vmem:[%s1949_s25 + $0x18] sm:$0xff]  ;;  %v390_v19 = vld [vmem:[%s1949_s25 + $0x28] sm:$0xff]  ;;  %v391_v23 = vld [vmem:[%s1949_s25 + $0x30] sm:$0xff] }
  0x6e   : > { %1394 = vmatprep.subr.bf16.mxu0 %v1584_v2  ;;  %v1595_v20 = vld [vmem:[#allocation4 + $0x28] sm:$0xff]   ;;  %v402_v21 = vpack.c.bf16 %v388_v17, %v387_v16  ;;  %v403_v22 = vpack.c.bf16 %v390_v19, %v389_v18  ;;  %v392_v24 = vld [vmem:[%s1949_s25 + $0x38] sm:$0xff]  ;;  %v393_v25 = vld [vmem:[%s1949_s25 + $0x40] sm:$0xff] }
  0x6f   : > { %v394_v26 = vld [vmem:[%s1949_s25 + $0x48] sm:$0xff]  ;;  %v404_v27 = vpack.c.bf16 %v392_v24, %v391_v23  ;;  %v395_v29 = vld [vmem:[%s1949_s25 + $0x50] sm:$0xff]  ;;  %v396_v30 = vld [vmem:[%s1949_s25 + $0x58] sm:$0xff] }
  0x70   : > { %1425 = vmatpush3.bf16.msra.mxu1 %v1591_v9  ;;  %v405_v28 = vpack.c.bf16 %v394_v26, %v393_v25  ;;  %v397_v31 = vld [vmem:[%s1949_s25 + $0x60] sm:$0xff]  ;;  %v398_v32 = vld [vmem:[%s1949_s25 + $0x68] sm:$0xff]  ;;  %v406_v33 = vpack.c.bf16 %v396_v30, %v395_v29  ;;  %v399_v35 = vld [vmem:[%s1949_s25 + $0x70] sm:$0xff] }
  0x71   : > { %1395 = vmatpush3.bf16.msra.mxu0 %v1584_v2  ;;  %1426 = vmatprep.subr.bf16.mxu1 %v1592_v11  ;;  %v407_v34 = vpack.c.bf16 %v398_v32, %v397_v31  ;;  %v400_v36 = vld [vmem:[%s1949_s25 + $0x78] sm:$0xff]  ;;  %v1596_v38 = vld [vmem:[#allocation4 + $0x30] sm:$0xff]   ;;  %v1598_v40 = vld [vmem:[#allocation6] sm:$0xff]  }
  0x72   : > { %1396 = vmatprep.subr.bf16.mxu0 %v1585_v3  ;;  %v408_v37 = vpack.c.bf16 %v400_v36, %v399_v35  ;;  %v1597_v39 = vld [vmem:[#allocation4 + $0x38] sm:$0xff]   ;;  %v1599_v41 = vld [vmem:[#allocation6 + $0x8] sm:$0xff]   ;;  %v1600_v42 = vld [vmem:[#allocation6 + $0x10] sm:$0xff]  }
  0x73   : > { %v1601_v43 = vld [vmem:[#allocation6 + $0x18] sm:$0xff]   ;;  %v1602_v44 = vld [vmem:[#allocation6 + $0x20] sm:$0xff]   ;;  %v1603_v45 = vld [vmem:[#allocation6 + $0x28] sm:$0xff]  }
  0x74   : > { %1427 = vmatpush3.bf16.msra.mxu1 %v1592_v11  ;;  %v1287_v46 = vld [vmem:[%s2089_s2] ss:$0 sm:$0xff] }
  0x75   : > { %1397 = vmatpush3.bf16.msra.mxu0 %v1585_v3  ;;  %1428 = vmatprep.subr.bf16.mxu1 %v1593_v13 }
  0x76   : > { %1398 = vmatprep.subr.bf16.mxu0 %v1586_v7 }
  0x78   : > { %1429 = vmatpush3.bf16.msra.mxu1 %v1593_v13 }
  0x79   : > { %1399 = vmatpush3.bf16.msra.mxu0 %v1586_v7  ;;  %1430 = vmatprep.subr.bf16.mxu1 %v1594_v15 }
  0x7a   : > { %1400 = vmatprep.subr.bf16.mxu0 %v1587_v10 }
  0x7c   : > { %1431 = vmatpush3.bf16.msra.mxu1 %v1594_v15 }
  0x7d   : > { %1401 = vmatpush3.bf16.msra.mxu0 %v1587_v10  ;;  %1432 = vmatprep.subr.bf16.mxu1 %v1595_v20 }
  0x7e   : > { %1402 = vmatprep.subr.bf16.mxu0 %v1588_v12 }
  0x80   : > { %1433 = vmatpush3.bf16.msra.mxu1 %v1595_v20 }
  0x81   : > { %1403 = vmatpush3.bf16.msra.mxu0 %v1588_v12  ;;  %1434 = vmatprep.subr.bf16.mxu1 %v1596_v38 }
  0x82   : > { %1404 = vmatprep.subr.bf16.mxu0 %v1589_v14 }
  0x84   : > { %1435 = vmatpush3.bf16.msra.mxu1 %v1596_v38 }
  0x85   : > { %1405 = vmatpush3.bf16.msra.mxu0 %v1589_v14  ;;  %1436 = vmatprep.subr.bf16.mxu1 %v1597_v39 }
  0x86   : > { %1454 = vmatprep.subr.bf16.mxu0 %v1598_v40 }
  0x88   : > { %1407 = vmatmul.mubr.bf16.vlgmr.msra.gmra.mrb[0].mxu0 %v402_v21  ;;  %1437 = vmatpush3.bf16.msra.mxu1 %v1597_v39  ;;  %v1604_v39 = vld [vmem:[#allocation6 + $0x30] sm:$0xff]  }
  0x89   : > { %1410 = vmatprep.mubr.bf16.mxu0 %v403_v22  ;;  %1455 = vmatpush3.bf16.msra.mxu0 %v1598_v40  ;;  %v1605_v40 = vld [vmem:[#allocation6 + $0x38] sm:$0xff]  }
  0x8a   : > { %1456 = vmatprep.subr.bf16.mxu0 %v1599_v41 }
  0x8d   : > { %1457 = vmatpush3.bf16.msra.mxu0 %v1599_v41  ;;  %v1606_v41 = vld [vmem:[%s2094_s7] sm:$0xff]  }
  0x8e   : > { %1458 = vmatprep.subr.bf16.mxu0 %v1600_v42  ;;  %1486 = vmatprep.subr.bf16.mxu1 %v1606_v41 }
  0x90   : > { %1411 = vmatmul.mubr.bf16.gmra.mrb[4].mxu0 %v404_v27 }
  0x91   : > { %1414 = vmatprep.mubr.bf16.mxu0 %v405_v28  ;;  %1459 = vmatpush3.bf16.msra.mxu0 %v1600_v42  ;;  %v1607_v42 = vld [vmem:[%s2094_s7 + $0x8] sm:$0xff]  }
  0x92   : > { %1460 = vmatprep.subr.bf16.mxu0 %v1601_v43 }
  0x95   : > { %1461 = vmatpush3.bf16.msra.mxu0 %v1601_v43  ;;  %v1608_v43 = vld [vmem:[%s2094_s7 + $0x10] sm:$0xff]  }
  0x96   : > { %1462 = vmatprep.subr.bf16.mxu0 %v1602_v44 }
  0x98   : > { %1415 = vmatmul.mubr.bf16.gmra.mrb[8].mxu0 %v406_v33 }
  0x99   : > { %1418 = vmatprep.mubr.bf16.mxu0 %v407_v34  ;;  %1463 = vmatpush3.bf16.msra.mxu0 %v1602_v44  ;;  %v1609_v44 = vld [vmem:[%s2094_s7 + $0x18] sm:$0xff]  }
  0x9a   : > { %1464 = vmatprep.subr.bf16.mxu0 %v1603_v45 }
  0x9d   : > { %1465 = vmatpush3.bf16.msra.mxu0 %v1603_v45  ;;  %v1610_v45 = vld [vmem:[%s2094_s7 + $0x20] sm:$0xff]  }
  0x9e   : > { %1466 = vmatprep.subr.bf16.mxu0 %v1604_v39 }
  0xa0   : > { %1419 = vmatmul.mubr.bf16.gmra.mrb[12].mxu0 %v408_v37 }
  0xa1   : > { %1467 = vmatpush3.bf16.msra.mxu0 %v1604_v39 }
  0xa2   : > { %1468 = vmatprep.subr.bf16.mxu0 %v1605_v40 }
  0xa5   : > { %1469 = vmatpush3.bf16.msra.mxu0 %v1605_v40  ;;  %v1612_v40 = vld [vmem:[%s2094_s7 + $0x30] sm:$0xff]  }
 0x15b   : > { %v1408_v47 = vpop.f32.mrb[0].mxu0 }
 0x15c   : > { %v523_v48 = vadd.f32 %v1408_v47, %v1287_v46  ;;  %v514_v49 = vpop.f32.mrb[1].mxu0  ;;  %v1296_v47 = vld [vmem:[%s2091_s4] ss:$0 sm:$0xff] }
 0x15d   : > { %v515_v50 = vadd.f32 %v1287_v46, %v514_v49  ;;  %v1409_v51 = vpop.f32.mrb[2].mxu0 }
 0x15e   : > { %v526_v52 = vadd.f32 %v1409_v51, %v1287_v46  ;;  %v517_v53 = vpop.f32.mrb[3].mxu0  ;;  %v579_v55 = vmax.f32 %v523_v48, 0.0 }
 0x15f   : > { %v518_v54 = vadd.f32 %v1287_v46, %v517_v53  ;;  %v577_v57 = vmax.f32 %v515_v50, 0.0 }
 0x160   : > { %v580_v56 = vmax.f32 %v526_v52, 0.0 }
 0x161   : > { %v578_v58 = vmax.f32 %v518_v54, 0.0 }
 0x162   : > { %v594_v59 = vpack.c.bf16 %v580_v56, %v579_v55 }
 0x163   : > { %v1412_v60 = vpop.f32.mrb[4].mxu0  ;;  %v593_v61 = vpack.c.bf16 %v578_v58, %v577_v57 }
 0x164   : > { %v539_v62 = vadd.f32 %v1412_v60, %v1287_v46  ;;  %v530_v63 = vpop.f32.mrb[5].mxu0 }
 0x165   : > { %v531_v0 = vadd.f32 %v1287_v46, %v530_v63  ;;  %v1413_v1 = vpop.f32.mrb[6].mxu0  ;;  %1438 = vmatprep.mubr.bf16.mxu1 %v593_v61 }
 0x166   : > { %v542_v2 = vadd.f32 %v1413_v1, %v1287_v46  ;;  %v533_v3 = vpop.f32.mrb[7].mxu0  ;;  %1439 = vmatmul.mubr.bf16.vlgmr.msra.gmra.mrb[0].mxu1 %v594_v59  ;;  %v583_v5 = vmax.f32 %v539_v62, 0.0 }
 0x167   : > { %v534_v4 = vadd.f32 %v1287_v46, %v533_v3  ;;  %v581_v7 = vmax.f32 %v531_v0, 0.0  ;;  %1487 = vmatpush3.bf16.msra.mxu1 %v1606_v41  ;;  %v1613_v41 = vld [vmem:[%s2094_s7 + $0x38] sm:$0xff]  }
 0x168   : > { %v584_v6 = vmax.f32 %v542_v2, 0.0  ;;  %1488 = vmatprep.subr.bf16.mxu1 %v1607_v42 }
 0x169   : > { %v582_v8 = vmax.f32 %v534_v4, 0.0 }
 0x16a   : > { %v596_v9 = vpack.c.bf16 %v584_v6, %v583_v5 }
 0x16b   : > { %v595_v10 = vpack.c.bf16 %v582_v8, %v581_v7  ;;  %v1416_v11 = vpop.f32.mrb[8].mxu0  ;;  %1489 = vmatpush3.bf16.msra.mxu1 %v1607_v42  ;;  %v1305_v42 = vld [vmem:[%s2093_s6] ss:$0 sm:$0xff] }
 0x16c   : > { %v555_v12 = vadd.f32 %v1416_v11, %v1287_v46  ;;  %v546_v13 = vpop.f32.mrb[9].mxu0  ;;  %1490 = vmatprep.subr.bf16.mxu1 %v1608_v43 }
 0x16d   : > { %v547_v14 = vadd.f32 %v1287_v46, %v546_v13  ;;  %v1417_v15 = vpop.f32.mrb[10].mxu0  ;;  %1442 = vmatprep.mubr.bf16.mxu1 %v595_v10 }
 0x16e   : > { %v558_v16 = vadd.f32 %v1417_v15, %v1287_v46  ;;  %v549_v17 = vpop.f32.mrb[11].mxu0  ;;  %1443 = vmatmul.mubr.bf16.gmra.mrb[4].mxu1 %v596_v9  ;;  %v587_v19 = vmax.f32 %v555_v12, 0.0 }
 0x16f   : > { %v550_v18 = vadd.f32 %v1287_v46, %v549_v17  ;;  %v585_v21 = vmax.f32 %v547_v14, 0.0  ;;  %1491 = vmatpush3.bf16.msra.mxu1 %v1608_v43 }
 0x170   : > { %v588_v20 = vmax.f32 %v558_v16, 0.0  ;;  %1492 = vmatprep.subr.bf16.mxu1 %v1609_v44 }
 0x171   : > { %v586_v22 = vmax.f32 %v550_v18, 0.0 }
 0x172   : > { %v598_v23 = vpack.c.bf16 %v588_v20, %v587_v19 }
 0x173   : > { %v597_v24 = vpack.c.bf16 %v586_v22, %v585_v21  ;;  %v1420_v25 = vpop.f32.mrb[12].mxu0  ;;  %1493 = vmatpush3.bf16.msra.mxu1 %v1609_v44 }
 0x174   : > { %v571_v26 = vadd.f32 %v1420_v25, %v1287_v46  ;;  %v562_v27 = vpop.f32.mrb[13].mxu0  ;;  %1494 = vmatprep.subr.bf16.mxu1 %v1610_v45 }
 0x175   : > { %v563_v28 = vadd.f32 %v1287_v46, %v562_v27  ;;  %v1421_v29 = vpop.f32.mrb[14].mxu0  ;;  %1446 = vmatprep.mubr.bf16.mxu1 %v597_v24 }
 0x176   : > { %v574_v30 = vadd.f32 %v1421_v29, %v1287_v46  ;;  %v565_v31 = vpop.f32.mrb[15].mxu0  ;;  %1447 = vmatmul.mubr.bf16.gmra.mrb[8].mxu1 %v598_v23  ;;  %v591_v33 = vmax.f32 %v571_v26, 0.0 }
 0x177   : > { %v566_v32 = vadd.f32 %v1287_v46, %v565_v31  ;;  %v589_v35 = vmax.f32 %v563_v28, 0.0  ;;  %v1611_v46 = vld [vmem:[%s2094_s7 + $0x28] sm:$0xff]   ;;  %1495 = vmatpush3.bf16.msra.mxu1 %v1610_v45 }
 0x178   : > { %v592_v34 = vmax.f32 %v574_v30, 0.0  ;;  %1496 = vmatprep.subr.bf16.mxu1 %v1611_v46 }
 0x179   : > { %v590_v36 = vmax.f32 %v566_v32, 0.0 }
 0x17a   : > { %v600_v37 = vpack.c.bf16 %v592_v34, %v591_v33 }
 0x17b   : > { %v599_v38 = vpack.c.bf16 %v590_v36, %v589_v35  ;;  %1497 = vmatpush3.bf16.msra.mxu1 %v1611_v46 }
 0x17c   : > { %1498 = vmatprep.subr.bf16.mxu1 %v1612_v40 }
 0x17d   : > { %1450 = vmatprep.mubr.bf16.mxu1 %v599_v38 }
 0x17e   : > { %1451 = vmatmul.mubr.bf16.gmra.mrb[12].mxu1 %v600_v37 }
 0x17f   : > { %1499 = vmatpush3.bf16.msra.mxu1 %v1612_v40 }
 0x180   : > { %1500 = vmatprep.subr.bf16.mxu1 %v1613_v41 }
 0x183   : > { %1501 = vmatpush3.bf16.msra.mxu1 %v1613_v41 }
 0x239   : > { %v1440_v48 = vpop.f32.mrb[0].mxu1 }
 0x23a   : > { %v715_v49 = vadd.f32 %v1440_v48, %v1296_v47  ;;  %v706_v50 = vpop.f32.mrb[1].mxu1 }
 0x23b   : > { %v707_v51 = vadd.f32 %v1296_v47, %v706_v50  ;;  %v1441_v52 = vpop.f32.mrb[2].mxu1 }
 0x23c   : > { %v718_v53 = vadd.f32 %v1441_v52, %v1296_v47  ;;  %v709_v54 = vpop.f32.mrb[3].mxu1  ;;  %v771_v56 = vmax.f32 %v715_v49, 0.0 }
 0x23d   : > { %v710_v55 = vadd.f32 %v1296_v47, %v709_v54  ;;  %v769_v58 = vmax.f32 %v707_v51, 0.0 }
 0x23e   : > { %v772_v57 = vmax.f32 %v718_v53, 0.0 }
 0x23f   : > { %v770_v59 = vmax.f32 %v710_v55, 0.0 }
 0x240   : > { %v786_v60 = vpack.c.bf16 %v772_v57, %v771_v56 }
 0x241   : > { %v785_v61 = vpack.c.bf16 %v770_v59, %v769_v58  ;;  %v1444_v62 = vpop.f32.mrb[4].mxu1 }
 0x242   : > { %v731_v63 = vadd.f32 %v1444_v62, %v1296_v47  ;;  %v722_v0 = vpop.f32.mrb[5].mxu1 }
 0x243   : > { %v723_v1 = vadd.f32 %v1296_v47, %v722_v0  ;;  %v1445_v2 = vpop.f32.mrb[6].mxu1  ;;  %1470 = vmatprep.mubr.bf16.mxu0 %v785_v61 }
 0x244   : > { %v734_v3 = vadd.f32 %v1445_v2, %v1296_v47  ;;  %v725_v4 = vpop.f32.mrb[7].mxu1  ;;  %1471 = vmatmul.mubr.bf16.vlgmr.msra.gmra.mrb[16].mxu0 %v786_v60  ;;  %v775_v6 = vmax.f32 %v731_v63, 0.0 }
 0x245   : > { %v726_v5 = vadd.f32 %v1296_v47, %v725_v4  ;;  %v773_v8 = vmax.f32 %v723_v1, 0.0 }
 0x246   : > { %v776_v7 = vmax.f32 %v734_v3, 0.0 }
 0x247   : > { %v774_v9 = vmax.f32 %v726_v5, 0.0 }
 0x248   : > { %v788_v10 = vpack.c.bf16 %v776_v7, %v775_v6 }
 0x249   : > { %v787_v11 = vpack.c.bf16 %v774_v9, %v773_v8  ;;  %v1448_v12 = vpop.f32.mrb[8].mxu1 }
 0x24a   : > { %v747_v13 = vadd.f32 %v1448_v12, %v1296_v47  ;;  %v738_v14 = vpop.f32.mrb[9].mxu1 }
 0x24b   : > { %v739_v15 = vadd.f32 %v1296_v47, %v738_v14  ;;  %v1449_v16 = vpop.f32.mrb[10].mxu1  ;;  %1474 = vmatprep.mubr.bf16.mxu0 %v787_v11 }
 0x24c   : > { %v750_v17 = vadd.f32 %v1449_v16, %v1296_v47  ;;  %v741_v18 = vpop.f32.mrb[11].mxu1  ;;  %1475 = vmatmul.mubr.bf16.gmra.mrb[20].mxu0 %v788_v10  ;;  %v779_v20 = vmax.f32 %v747_v13, 0.0 }
 0x24d   : > { %v742_v19 = vadd.f32 %v1296_v47, %v741_v18  ;;  %v777_v22 = vmax.f32 %v739_v15, 0.0 }
 0x24e   : > { %v780_v21 = vmax.f32 %v750_v17, 0.0 }
 0x24f   : > { %v778_v23 = vmax.f32 %v742_v19, 0.0 }
 0x250   : > { %v790_v24 = vpack.c.bf16 %v780_v21, %v779_v20 }
 0x251   : > { %v789_v25 = vpack.c.bf16 %v778_v23, %v777_v22  ;;  %v1452_v26 = vpop.f32.mrb[12].mxu1 }
 0x252   : > { %v763_v27 = vadd.f32 %v1452_v26, %v1296_v47  ;;  %v754_v28 = vpop.f32.mrb[13].mxu1 }
 0x253   : > { %v755_v29 = vadd.f32 %v1296_v47, %v754_v28  ;;  %v1453_v30 = vpop.f32.mrb[14].mxu1  ;;  %1478 = vmatprep.mubr.bf16.mxu0 %v789_v25 }
 0x254   : > { %v766_v31 = vadd.f32 %v1453_v30, %v1296_v47  ;;  %v757_v32 = vpop.f32.mrb[15].mxu1  ;;  %1479 = vmatmul.mubr.bf16.gmra.mrb[24].mxu0 %v790_v24  ;;  %v783_v34 = vmax.f32 %v763_v27, 0.0 }
 0x255   : > { %v758_v33 = vadd.f32 %v1296_v47, %v757_v32  ;;  %v781_v36 = vmax.f32 %v755_v29, 0.0 }
 0x256   : > { %v784_v35 = vmax.f32 %v766_v31, 0.0 }
 0x257   : > { %v782_v37 = vmax.f32 %v758_v33, 0.0 }
 0x258   : > { %v792_v38 = vpack.c.bf16 %v784_v35, %v783_v34  ;;  %v1314_v35 = vld [vmem:[%s2095_s8] ss:$0 sm:$0xff] }
 0x259   : > { %v791_v39 = vpack.c.bf16 %v782_v37, %v781_v36 }
 0x25b   : > { %1482 = vmatprep.mubr.bf16.mxu0 %v791_v39 }
 0x25c   : > { %1483 = vmatmul.mubr.bf16.gmra.mrb[28].mxu0 %v792_v38 }
 0x317   : > { %v1472_v43 = vpop.f32.mrb[16].mxu0 }
 0x318   : > { %v907_v44 = vadd.f32 %v1472_v43, %v1305_v42  ;;  %v898_v45 = vpop.f32.mrb[17].mxu0 }
 0x319   : > { %v899_v46 = vadd.f32 %v1305_v42, %v898_v45  ;;  %v1473_v47 = vpop.f32.mrb[18].mxu0 }
 0x31a   : > { %v910_v48 = vadd.f32 %v1473_v47, %v1305_v42  ;;  %v901_v49 = vpop.f32.mrb[19].mxu0  ;;  %v963_v51 = vmax.f32 %v907_v44, 0.0 }
 0x31b   : > { %v902_v50 = vadd.f32 %v1305_v42, %v901_v49  ;;  %v961_v53 = vmax.f32 %v899_v46, 0.0 }
 0x31c   : > { %v964_v52 = vmax.f32 %v910_v48, 0.0 }
 0x31d   : > { %v962_v54 = vmax.f32 %v902_v50, 0.0 }
 0x31e   : > { %v978_v55 = vpack.c.bf16 %v964_v52, %v963_v51 }
 0x31f   : > { %v977_v56 = vpack.c.bf16 %v962_v54, %v961_v53  ;;  %v1476_v57 = vpop.f32.mrb[20].mxu0 }
 0x320   : > { %v923_v58 = vadd.f32 %v1476_v57, %v1305_v42  ;;  %v914_v59 = vpop.f32.mrb[21].mxu0 }
 0x321   : > { %v915_v60 = vadd.f32 %v1305_v42, %v914_v59  ;;  %v1477_v61 = vpop.f32.mrb[22].mxu0  ;;  %1502 = vmatprep.mubr.bf16.mxu1 %v977_v56 }
 0x322   : > { %v926_v62 = vadd.f32 %v1477_v61, %v1305_v42  ;;  %v917_v63 = vpop.f32.mrb[23].mxu0  ;;  %1503 = vmatmul.mubr.bf16.vlgmr.msra.gmra.mrb[16].mxu1 %v978_v55  ;;  %v967_v1 = vmax.f32 %v923_v58, 0.0 }
 0x323   : > { %v918_v0 = vadd.f32 %v1305_v42, %v917_v63  ;;  %v965_v3 = vmax.f32 %v915_v60, 0.0 }
 0x324   : > { %v968_v2 = vmax.f32 %v926_v62, 0.0 }
 0x325   : > { %v966_v4 = vmax.f32 %v918_v0, 0.0 }
 0x326   : > { %v980_v5 = vpack.c.bf16 %v968_v2, %v967_v1 }
 0x327   : > { %v979_v6 = vpack.c.bf16 %v966_v4, %v965_v3  ;;  %v1480_v7 = vpop.f32.mrb[24].mxu0 }
 0x328   : > { %v939_v8 = vadd.f32 %v1480_v7, %v1305_v42  ;;  %v930_v9 = vpop.f32.mrb[25].mxu0 }
 0x329   : > { %v931_v10 = vadd.f32 %v1305_v42, %v930_v9  ;;  %v1481_v11 = vpop.f32.mrb[26].mxu0  ;;  %1506 = vmatprep.mubr.bf16.mxu1 %v979_v6 }
 0x32a   : > { %v942_v12 = vadd.f32 %v1481_v11, %v1305_v42  ;;  %v933_v13 = vpop.f32.mrb[27].mxu0  ;;  %1507 = vmatmul.mubr.bf16.gmra.mrb[20].mxu1 %v980_v5  ;;  %v971_v15 = vmax.f32 %v939_v8, 0.0 }
 0x32b   : > { %v934_v14 = vadd.f32 %v1305_v42, %v933_v13  ;;  %v969_v17 = vmax.f32 %v931_v10, 0.0 }
 0x32c   : > { %v972_v16 = vmax.f32 %v942_v12, 0.0 }
 0x32d   : > { %v970_v18 = vmax.f32 %v934_v14, 0.0 }
 0x32e   : > { %v982_v19 = vpack.c.bf16 %v972_v16, %v971_v15 }
 0x32f   : > { %v981_v20 = vpack.c.bf16 %v970_v18, %v969_v17  ;;  %v1484_v21 = vpop.f32.mrb[28].mxu0 }
 0x330   : > { %v955_v22 = vadd.f32 %v1484_v21, %v1305_v42  ;;  %v946_v23 = vpop.f32.mrb[29].mxu0 }
 0x331   : > { %v947_v24 = vadd.f32 %v1305_v42, %v946_v23  ;;  %v1485_v25 = vpop.f32.mrb[30].mxu0  ;;  %1510 = vmatprep.mubr.bf16.mxu1 %v981_v20 }
 0x332   : > { %v958_v26 = vadd.f32 %v1485_v25, %v1305_v42  ;;  %v949_v27 = vpop.f32.mrb[31].mxu0  ;;  %1511 = vmatmul.mubr.bf16.gmra.mrb[24].mxu1 %v982_v19  ;;  %v975_v29 = vmax.f32 %v955_v22, 0.0 }
 0x333   : > { %v950_v28 = vadd.f32 %v1305_v42, %v949_v27  ;;  %v973_v31 = vmax.f32 %v947_v24, 0.0 }
 0x334   : > { %v976_v30 = vmax.f32 %v958_v26, 0.0 }
 0x335   : > { %v974_v32 = vmax.f32 %v950_v28, 0.0 }
 0x336   : > { %v984_v33 = vpack.c.bf16 %v976_v30, %v975_v29 }
 0x337   : > { %v983_v34 = vpack.c.bf16 %v974_v32, %v973_v31 }
 0x339   : > { %1514 = vmatprep.mubr.bf16.mxu1 %v983_v34 }
 0x33a   : > { %1515 = vmatmul.mubr.bf16.gmra.mrb[28].mxu1 %v984_v33 }
 0x3f5   : > { %v1504_v36 = vpop.f32.mrb[16].mxu1 }
 0x3f6   : > { %v1099_v37 = vadd.f32 %v1504_v36, %v1314_v35  ;;  %v1090_v38 = vpop.f32.mrb[17].mxu1 }
 0x3f7   : > { %v1091_v39 = vadd.f32 %v1314_v35, %v1090_v38  ;;  %v1505_v40 = vpop.f32.mrb[18].mxu1 }
 0x3f8   : > { %v1155_v41 = vmax.f32 %v1099_v37, 0.0  ;;  %v1102_v42 = vadd.f32 %v1505_v40, %v1314_v35  ;;  %v1093_v43 = vpop.f32.mrb[19].mxu1 }
 0x3f9   : > { %v1153_v44 = vmax.f32 %v1091_v39, 0.0  ;;  %v1094_v45 = vadd.f32 %v1314_v35, %v1093_v43 }
 0x3fa   : > { %1172 = vst.msk [vmem:[%s2040_s16 + $0x10] sm:$0xff] %vm1169_vm0, %v1155_v41  ;;  %v1156_v46 = vmax.f32 %v1102_v42, 0.0 }
 0x3fb   : > { %1170 = vst.msk [vmem:[%s2040_s16] sm:$0xff] %vm1169_vm0, %v1153_v44  ;;  %v1154_v47 = vmax.f32 %v1094_v45, 0.0 }
 0x3fc   : > { %1173 = vst.msk [vmem:[%s2040_s16 + $0x18] sm:$0xff] %vm1169_vm0, %v1156_v46 }
 0x3fd   : > { %1171 = vst.msk [vmem:[%s2040_s16 + $0x8] sm:$0xff] %vm1169_vm0, %v1154_v47  ;;  %v1508_v48 = vpop.f32.mrb[20].mxu1 }
 0x3fe   : > { %v1115_v49 = vadd.f32 %v1508_v48, %v1314_v35  ;;  %v1106_v50 = vpop.f32.mrb[21].mxu1 }
 0x3ff   : > { %v1107_v51 = vadd.f32 %v1314_v35, %v1106_v50  ;;  %v1509_v52 = vpop.f32.mrb[22].mxu1 }
 0x400   : > { %v1159_v53 = vmax.f32 %v1115_v49, 0.0  ;;  %v1118_v54 = vadd.f32 %v1509_v52, %v1314_v35  ;;  %v1109_v55 = vpop.f32.mrb[23].mxu1 }
 0x401   : > { %v1157_v56 = vmax.f32 %v1107_v51, 0.0  ;;  %v1110_v57 = vadd.f32 %v1314_v35, %v1109_v55 }
 0x402   : > { %1176 = vst.msk [vmem:[%s2040_s16 + $0x30] sm:$0xff] %vm1169_vm0, %v1159_v53  ;;  %v1160_v58 = vmax.f32 %v1118_v54, 0.0 }
 0x403   : > { %1174 = vst.msk [vmem:[%s2040_s16 + $0x20] sm:$0xff] %vm1169_vm0, %v1157_v56  ;;  %v1158_v59 = vmax.f32 %v1110_v57, 0.0 }
 0x404   : > { %1177 = vst.msk [vmem:[%s2040_s16 + $0x38] sm:$0xff] %vm1169_vm0, %v1160_v58 }
 0x405   : > { %1175 = vst.msk [vmem:[%s2040_s16 + $0x28] sm:$0xff] %vm1169_vm0, %v1158_v59  ;;  %v1512_v60 = vpop.f32.mrb[24].mxu1 }
 0x406   : > { %v1131_v61 = vadd.f32 %v1512_v60, %v1314_v35  ;;  %v1122_v62 = vpop.f32.mrb[25].mxu1 }
 0x407   : > { %v1123_v63 = vadd.f32 %v1314_v35, %v1122_v62  ;;  %v1513_v0 = vpop.f32.mrb[26].mxu1 }
 0x408   : > { %v1163_v1 = vmax.f32 %v1131_v61, 0.0  ;;  %v1134_v2 = vadd.f32 %v1513_v0, %v1314_v35  ;;  %v1125_v3 = vpop.f32.mrb[27].mxu1 }
 0x409   : > { %v1161_v4 = vmax.f32 %v1123_v63, 0.0  ;;  %v1126_v5 = vadd.f32 %v1314_v35, %v1125_v3 }
 0x40a   : > { %1180 = vst.msk [vmem:[%s2040_s16 + $0x50] sm:$0xff] %vm1169_vm0, %v1163_v1  ;;  %v1164_v6 = vmax.f32 %v1134_v2, 0.0 }
 0x40b   : > { %1178 = vst.msk [vmem:[%s2040_s16 + $0x40] sm:$0xff] %vm1169_vm0, %v1161_v4  ;;  %v1162_v7 = vmax.f32 %v1126_v5, 0.0 }
 0x40c   : > { %1181 = vst.msk [vmem:[%s2040_s16 + $0x58] sm:$0xff] %vm1169_vm0, %v1164_v6 }
 0x40d   : > { %1179 = vst.msk [vmem:[%s2040_s16 + $0x48] sm:$0xff] %vm1169_vm0, %v1162_v7  ;;  %v1516_v8 = vpop.f32.mrb[28].mxu1 }
 0x40e   : > { %v1147_v9 = vadd.f32 %v1516_v8, %v1314_v35  ;;  %v1138_v10 = vpop.f32.mrb[29].mxu1 }
 0x40f   : > { %v1139_v11 = vadd.f32 %v1314_v35, %v1138_v10  ;;  %v1517_v12 = vpop.f32.mrb[30].mxu1 }
 0x410   : > { %v1167_v13 = vmax.f32 %v1147_v9, 0.0  ;;  %v1150_v14 = vadd.f32 %v1517_v12, %v1314_v35  ;;  %v1141_v15 = vpop.f32.mrb[31].mxu1 }
 0x411   : > { %v1165_v16 = vmax.f32 %v1139_v11, 0.0  ;;  %v1142_v17 = vadd.f32 %v1314_v35, %v1141_v15 }
 0x412   : > { %1184 = vst.msk [vmem:[%s2040_s16 + $0x70] sm:$0xff] %vm1169_vm0, %v1167_v13  ;;  %v1168_v18 = vmax.f32 %v1150_v14, 0.0 }
 0x413   : > { %1182 = vst.msk [vmem:[%s2040_s16 + $0x60] sm:$0xff] %vm1169_vm0, %v1165_v16  ;;  %v1166_v19 = vmax.f32 %v1142_v17, 0.0 }
 0x414   : > { %1185 = vst.msk [vmem:[%s2040_s16 + $0x78] sm:$0xff] %vm1169_vm0, %v1168_v18 }
 0x415   : > { %1183 = vst.msk [vmem:[%s2040_s16 + $0x68] sm:$0xff] %vm1169_vm0, %v1166_v19 }
 0x416 PF: > { %p20_p6 = scmp.ge.s32.totalorder %s1893_s23, 4   ;;  %s2109_s30 = smov %s1730_s10 }
 0x417   : > { %s2110_s10 = smov %s1734_s11  ;;  %s2111_s11 = smov %s1904_s26 }
 0x418   : > { %s2112_s12 = smov %s1893_s23  ;;  %22 = sbr.rel (!%p20_p6) target bundleno = 4 (0x4), region = 104 }
 0x41f   :  { %1208 = vsyncpa [#allocation3], 1 }
 0x420   :  { %1210 = vsyncpa [#allocation3 + $0x1], 1 }
 0x421   :  { %1211 = vsyncpa [#allocation5], 1 }

</bundles_post_ra>
